<compile_context>
chip_gen: v5e
topology: v5e:2x2
jax: 0.10.0
libtpu: 0.0.40
codegen_flags: <defaults>
</compile_context>

<pallas_src>
import functools

import jax
import jax.numpy as jnp
from jax import lax
from jax.experimental import pallas as pl
from jax.experimental.pallas import tpu as pltpu

# Synthetic stand-in for utils.get_bond_vocab_dims() (4 bond features, E x 4 input).
BOND_VOCAB_DIMS = (5, 6, 2, 3)
NUM_FEATS = len(BOND_VOCAB_DIMS)
OFFSETS = tuple(int(sum(BOND_VOCAB_DIMS[:i])) for i in range(NUM_FEATS))
V_TOTAL = int(sum(BOND_VOCAB_DIMS))
V_PAD = 128  # pad packed vocab (matmul K dim) to a full lane width


def _round_up(x, m):
    return ((x + m - 1) // m) * m


def _edge_embed_kernel(idx_ref, tbl_ref, out_ref, *, attr_reduction):
    # idx_ref: (tE, 4) int32, already offset into the packed vocab.
    # tbl_ref: (V_PAD, D_pad) f32; out_ref: (tE, D_pad) f32.
    idx = idx_ref[...]
    t_e, nf = idx.shape
    v_pad = tbl_ref.shape[0]

    # Multi-hot encoding: one "1" per feature column (offsets are disjoint, so
    # no collisions).  int32 accumulation, single f32 cast before the dot.
    vocab_iota = lax.broadcasted_iota(jnp.int32, (t_e, v_pad), 1)     # (tE, V_PAD)
    hot = (vocab_iota == idx[:, 0:1]).astype(jnp.int32)
    for f in range(1, nf):
        hot = hot + (vocab_iota == idx[:, f:f + 1]).astype(jnp.int32)
    multi_hot = hot.astype(jnp.float32)

    # One MXU matmul == sum (or concat, via block-diagonal table) of the lookups.
    acc = jnp.dot(multi_hot, tbl_ref[...], preferred_element_type=jnp.float32)
    if attr_reduction == "mean":
        acc = acc * (1.0 / nf)
    out_ref[...] = acc.astype(out_ref.dtype)


def _pack_table(table, attr_reduction, d_out_pad):
    """Zero-pad (V_TOTAL, D) table to (V_PAD, d_out_pad); block-diagonal for cat."""
    v, d = table.shape
    packed = jnp.zeros((V_PAD, d_out_pad), table.dtype)
    if attr_reduction in ("mean", "sum"):
        packed = packed.at[:v, :d].set(table)
    else:  # 'cat_last_dim'
        for f in range(NUM_FEATS):
            v0, v1 = OFFSETS[f], OFFSETS[f] + BOND_VOCAB_DIMS[f]
            packed = packed.at[v0:v1, f * d:(f + 1) * d].set(table[v0:v1])
    return packed


def _effective_tile(e, tile_e, min_blocks=8):
    """Big tile (multiple of 8), but keep >= min_blocks grid steps (megacore)."""
    cap = _round_up(max(1, -(-e // min_blocks)), 8)
    return max(8, min(_round_up(tile_e, 8), cap))


def edge_embedding(x, table, attr_reduction="mean", tile_e=1024):
    """x: (B, L, 4) integer indices; table: (V_TOTAL, D) f32 -> (B, L, D_out) f32."""
    assert attr_reduction in ("mean", "sum", "cat_last_dim")
    b, l, d = x.shape
    assert d == NUM_FEATS
    e = b * l
    emb_dim = table.shape[1]
    d_out = emb_dim * (NUM_FEATS if attr_reduction == "cat_last_dim" else 1)
    d_out_pad = _round_up(d_out, 128)  # lane-dense output stores

    # Clamp out-of-range indices (same behavior as jnp.take) and fold in the
    # per-feature packed-vocab offsets on the JAX side (no kernel constants).
    idx = x.reshape(e, d).astype(jnp.int32)
    maxes = jnp.asarray([v - 1 for v in BOND_VOCAB_DIMS], jnp.int32)
    offsets = jnp.asarray(OFFSETS, jnp.int32)
    idx = jnp.clip(idx, 0, maxes) + offsets[None, :]

    te = _effective_tile(e, tile_e)
    e_pad = _round_up(e, te)
    if e_pad > e:
        idx = jnp.pad(idx, ((0, e_pad - e), (0, 0)))
    grid = e_pad // te

    packed_tbl = _pack_table(table, attr_reduction, d_out_pad)

    cost = pl.CostEstimate(
        flops=2 * e_pad * V_PAD * d_out_pad,
        transcendentals=0,
        bytes_accessed=e_pad * NUM_FEATS * 4 + V_PAD * d_out_pad * 4
        + e_pad * d_out_pad * 4,
    )

    out = pl.pallas_call(
        functools.partial(_edge_embed_kernel, attr_reduction=attr_reduction),
        out_shape=jax.ShapeDtypeStruct((e_pad, d_out_pad), table.dtype),
        grid_spec=pltpu.PrefetchScalarGridSpec(
            num_scalar_prefetch=0,
            grid=(grid,),
            in_specs=[
                pl.BlockSpec((te, NUM_FEATS), lambda i: (i, 0)),
                pl.BlockSpec((V_PAD, d_out_pad), lambda i: (0, 0)),
            ],
            out_specs=pl.BlockSpec((te, d_out_pad), lambda i: (i, 0)),
        ),
        compiler_params=pltpu.CompilerParams(
            dimension_semantics=("parallel",)),
        cost_estimate=cost,
    )(idx, packed_tbl)

    return out[:e, :d_out].reshape(b, l, d_out)


def make_tables(key, bond_embedding_dim):
    """Xavier-uniform init per vocab table, concatenated along vocab dim."""
    tables = []
    for i, vocab in enumerate(BOND_VOCAB_DIMS):
        k = jax.random.fold_in(key, i)
        bound = (6.0 / (vocab + bond_embedding_dim)) ** 0.5
        tables.append(
            jax.random.uniform(k, (vocab, bond_embedding_dim), jnp.float32,
                               minval=-bound, maxval=bound))
    return jnp.concatenate(tables, axis=0)  # (V_TOTAL, D)


def edge_embedding_ref(x, table, attr_reduction="mean"):
    b, l, d = x.shape
    idx = x.reshape(-1, d).astype(jnp.int32)
    embs = []
    for f in range(NUM_FEATS):
        v0, v1 = OFFSETS[f], OFFSETS[f] + BOND_VOCAB_DIMS[f]
        embs.append(jnp.take(table[v0:v1], idx[:, f], axis=0))
    stacked = jnp.stack(embs, axis=1)  # (E, 4, D)
    if attr_reduction == "mean":
        red = jnp.mean(stacked, axis=1)
    elif attr_reduction == "sum":
        red = jnp.sum(stacked, axis=1)
    else:  # cat_last_dim
        red = jnp.concatenate(embs, axis=-1)
    return red.reshape(b, l, -1)


if __name__ == "__main__":
    key = jax.random.PRNGKey(0)
    B, L, D = 2, 64, 32

    table = make_tables(key, D)

    # Build valid indices per feature (each column bounded by its own vocab size).
    idx_key = jax.random.fold_in(key, 1000)
    cols = []
    for f, vocab in enumerate(BOND_VOCAB_DIMS):
        kf = jax.random.fold_in(idx_key, f)
        cols.append(jax.random.randint(kf, (B, L, 1), 0, vocab, dtype=jnp.int32))
    x = jnp.concatenate(cols, axis=-1)  # (B, L, 4) int32

    for mode, width in (("mean", D), ("sum", D), ("cat_last_dim", NUM_FEATS * D)):
        out = jax.block_until_ready(edge_embedding(x, table, attr_reduction=mode))
        ref = edge_embedding_ref(x, table, attr_reduction=mode)
        assert out.shape == (B, L, width), (mode, out.shape)
        assert jnp.allclose(out, ref, atol=1e-5, rtol=1e-5), mode

    print("KERNEL_OK")
</pallas_src>

<mosaic_0001>
module attributes {stable_mosaic.version = 11 : i64} {
  func.func @_edge_embed_kernel(%arg0: i32, %arg1: memref<16x4xi32, #tpu.memory_space<vmem>>, %arg2: memref<128x128xf32, #tpu.memory_space<vmem>>, %arg3: memref<16x128xf32, #tpu.memory_space<vmem>>) attributes {dimension_semantics = [#tpu.dimension_semantics<parallel>], iteration_bounds = array<i64: 8>, scalar_prefetch = 0 : i64, scratch_operands = 0 : i64, tpu.core_type = #tpu.core_type<tc>, window_params = [{transform_indices = @transform_0, window_bounds = array<i64: 16, 4>}, {pipeline_mode = #tpu.pipeline_mode<synchronous>, transform_indices = @transform_1, window_bounds = array<i64: 128, 128>}, {transform_indices = @transform_2, window_bounds = array<i64: 16, 128>}]} {
    %c0 = arith.constant 0 : index
    %c0_0 = arith.constant 0 : index
    %0 = vector.load %arg1[%c0, %c0_0] : memref<16x4xi32, #tpu.memory_space<vmem>>, vector<16x4xi32>
    %1 = tpu.iota {dimensions = array<i32: 1>} : vector<16x128xi32>
    %2 = vector.extract_strided_slice %0 {offsets = [0, 0], sizes = [16, 1], strides = [1, 1]} : vector<16x4xi32> to vector<16x1xi32>
    %3 = vector.broadcast %2 : vector<16x1xi32> to vector<16x128xi32>
    %4 = arith.cmpi eq, %1, %3 : vector<16x128xi32>
    %5 = arith.extui %4 : vector<16x128xi1> to vector<16x128xi32>
    %6 = vector.extract_strided_slice %0 {offsets = [0, 1], sizes = [16, 1], strides = [1, 1]} : vector<16x4xi32> to vector<16x1xi32>
    %7 = vector.broadcast %6 : vector<16x1xi32> to vector<16x128xi32>
    %8 = arith.cmpi eq, %1, %7 : vector<16x128xi32>
    %9 = arith.extui %8 : vector<16x128xi1> to vector<16x128xi32>
    %10 = arith.addi %5, %9 : vector<16x128xi32>
    %11 = vector.extract_strided_slice %0 {offsets = [0, 2], sizes = [16, 1], strides = [1, 1]} : vector<16x4xi32> to vector<16x1xi32>
    %12 = vector.broadcast %11 : vector<16x1xi32> to vector<16x128xi32>
    %13 = arith.cmpi eq, %1, %12 : vector<16x128xi32>
    %14 = arith.extui %13 : vector<16x128xi1> to vector<16x128xi32>
    %15 = arith.addi %10, %14 : vector<16x128xi32>
    %16 = vector.extract_strided_slice %0 {offsets = [0, 3], sizes = [16, 1], strides = [1, 1]} : vector<16x4xi32> to vector<16x1xi32>
    %17 = vector.broadcast %16 : vector<16x1xi32> to vector<16x128xi32>
    %18 = arith.cmpi eq, %1, %17 : vector<16x128xi32>
    %19 = arith.extui %18 : vector<16x128xi1> to vector<16x128xi32>
    %20 = arith.addi %15, %19 : vector<16x128xi32>
    %21 = arith.sitofp %20 : vector<16x128xi32> to vector<16x128xf32>
    %c0_1 = arith.constant 0 : index
    %c0_2 = arith.constant 0 : index
    %22 = vector.load %arg2[%c0_1, %c0_2] : memref<128x128xf32, #tpu.memory_space<vmem>>, vector<128x128xf32>
    %cst = arith.constant dense<0.000000e+00> : vector<16x128xf32>
    %23 = tpu.matmul %21, %22, %cst {dimension_numbers = #tpu.dot_dimension_numbers<[1], [0], [0], [1], [0, 0, 1, 1], [], []>} : vector<16x128xf32>, vector<128x128xf32>, vector<16x128xf32> -> vector<16x128xf32>
    %cst_3 = arith.constant 2.500000e-01 : f32
    %24 = vector.broadcast %cst_3 : f32 to vector<16x128xf32>
    %25 = arith.mulf %23, %24 : vector<16x128xf32>
    %c0_4 = arith.constant 0 : index
    %c0_5 = arith.constant 0 : index
    %26 = vector.load %arg3[%c0_4, %c0_5] : memref<16x128xf32, #tpu.memory_space<vmem>>, vector<16x128xf32>
    tpu.vector_store %arg3[%c0_4, %c0_5], %25 {strides = array<i32>} : memref<16x128xf32, #tpu.memory_space<vmem>>, vector<16x128xf32>,
    return
  }
  func.func @transform_0(%arg0: i32) -> (i32, i32) {
    %c0_i32 = arith.constant 0 : i32
    %c0_i32_0 = arith.constant 0 : i32
    return %arg0, %c0_i32 : i32, i32
  }
  func.func @transform_1(%arg0: i32) -> (i32, i32) {
    %c0_i32 = arith.constant 0 : i32
    %c0_i32_0 = arith.constant 0 : i32
    %c0_i32_1 = arith.constant 0 : i32
    return %c0_i32, %c0_i32_0 : i32, i32
  }
  func.func @transform_2(%arg0: i32) -> (i32, i32) {
    %c0_i32 = arith.constant 0 : i32
    %c0_i32_0 = arith.constant 0 : i32
    return %arg0, %c0_i32 : i32, i32
  }
}

</mosaic_0001>

<bundles_post_ra>
// kernel: tpu_custom_call.1
= control target key start
LH: loop header
LB: loop body
LE: loop exit
PB: predicated region body
PF: predicated region fallthrough
CT: control target
= control target key end

     0   :  { %7 = vsyncpa [#allocation3], 0  ;;  %s623_s0 = inlined_call_operand.vmem [shape: s32[128,4], index: 0, kind: input, shape index: {}]   ;;  %s624_s1 = inlined_call_operand.vmem [shape: f32[128,128], index: 1, kind: input, shape index: {}]   ;;  %s625_s2 = inlined_call_operand.hbm [shape: f32[128,128], index: 2, kind: output, shape index: {}]  }
   0x1   :  { %9 = vsyncpa [#allocation3 + $0x1], 0  ;;  %s482_s9 = smov 0   ;;  %s484_s10 = smov 0  }
   0x2   :  { %s486_s11 = smov 0   ;;  %s488_s12 = smov 0  }
   0x3 LB: > { %s503_s13 = sadd.s32 4294967295, %s459_s12   ;;  %s318_s14 = sadd.s32 4294967294, %s459_s12   ;;  %s459_s12 = sphi %s488_s12, %s631_s12   ;;  %s455_s11 = sphi %s486_s11, %s630_s11   ;;  %s451_s10 = sphi %s484_s10, %s629_s10   ;;  %s447_s9 = sphi %s482_s9, %s628_s9  }
   0x4   : > { %s507_s15 = sadd.s32 1, %s459_s12   ;;  %s69_s16 = sadd.s32 1, %s455_s11 }
   0x5   : > { %s66_s17 = ssub.s32 %s459_s12, %s507_s15  ;;  %p79_p0 = scmp.ne.s32.totalorder %s455_s11, %s451_s10 }
   0x6   : > { %p67_p1 = scmp.eq.s32.totalorder %s66_s17, 0  ;;  %p80_p2 = scmp.eq.s32.totalorder %s503_s13, 7 }
   0x7   : > { %p85_p3 = scmp.ne.s32.totalorder %s451_s10, %s447_s9  ;;  %p86_p4 = scmp.eq.s32.totalorder %s318_s14, 7 }
   0x8   : > { %s518_s18 = scalar_select %p67_p1, %s455_s11, %s69_s16  }
   0x9   : > { %p520_p5 = por %p80_p2, %p79_p0  ;;  %p524_p6 = por %p86_p4, %p85_p3 }
   0xa   : > { %p321_p7 = scmp.ge.s32.totalorder %s459_s12, 1  ;;  %p116_p8 = scmp.lt.s32.totalorder %s459_s12, 9 }
   0xc   : > { %p117_p9 = pnand %p321_p7, %p116_p8 }
   0xd   : > { %s323_s21 = sshll.u32 (!%p117_p9), %s503_s13, 1  ;;  %s135_s17 = sand.u32 (!%p117_p9), 1, %s451_s10  }
   0xe   : > { %120 = sbr.rel (%p117_p9) target bundleno = 294 (0x126), region = 28  ;;  %p139_p10 = scmp.lt.s32.totalorder (!%p117_p9), %s323_s21, 15 }
   0xf   : > { %s330_s22 = sshll.u32 (!%p117_p9), %s503_s13, 4  ;;  %s241_s29 = scalar_lea.sflag (!%p117_p9), [#allocation3], %s135_s17 }
  0x10   : > { %s252_s25 = scalar_lea.hbm (!%p117_p9), %s625_s2, %s330_s22  ;;  %s417_s5 = scalar_lea.hbm (!%p117_p9), %s625_s2, 128 }
  0x13   : > { %v212_v0 = vld [vmem:[%s624_s1 + $0x78] sm:$0xff]  ;;  %v461_v1 = vmov 1   ;;  %v462_v2 = vmov 0   ;;  %v211_v3 = vld [vmem:[%s624_s1 + $0x70] sm:$0xff]  ;;  %v463_v4 = vmov 2   ;;  %s633_s21 = smov (!%p139_p10, %s323_s21), 15  ;;  %v147_v22 = vlaneseq }
  0x14   : > { %393 = vset.pattern.permute.xlu1 %v461_v1  ;;  %392 = vset.pattern.permute.xlu0 %v462_v2  ;;  %v210_v5 = vld [vmem:[%s624_s1 + $0x68] sm:$0xff]  ;;  %s324_s28 = sshll.u32 %s633_s21, 3  ;;  %v209_v6 = vld [vmem:[%s624_s1 + $0x60] sm:$0xff]  ;;  %v464_v9 = vmov 3   ;;  %v208_v10 = vld [vmem:[%s624_s1 + $0x58] sm:$0xff]  ;;  %s322_s21 = sshll.u32 %s135_s17, 4 }
  0x15   : > { %394 = vset.pattern.permute.xlu2 %v463_v4  ;;  %213 = vmatpush.msra.mxu0 %v212_v0  ;;  %s142_s3 = scalar_lea.vmem %s623_s0, %s324_s28  ;;  %v207_v11 = vld [vmem:[%s624_s1 + $0x50] sm:$0xff]  ;;  %v206_v12 = vld [vmem:[%s624_s1 + $0x48] sm:$0xff]  ;;  %v205_v13 = vld [vmem:[%s624_s1 + $0x40] sm:$0xff]  ;;  %v148_v26 = vand.u32 127, %v147_v22  ;;  %s137_s26 = scalar_lea.vmem [#allocation2], %s322_s21 }
  0x16   : > { %331 = vmatpush.msra.mxu1 %v212_v0  ;;  %v145_v7 = vld [vmem:[%s142_s3] sm:$0xff]  ;;  %v146_v8 = vld [vmem:[%s142_s3 + $0x8] sm:$0xff]  ;;  %v204_v14 = vld [vmem:[%s624_s1 + $0x38] sm:$0xff]  ;;  %s253_s27 = sshll.u32 %s137_s26, 4  ;;  %s255_s28 = sshll.u32 %s252_s25, 4  ;;  %s254_s27 = int_to_ptr.vmem [resolvable:$true] %s253_s27  ;;  %s256_s28 = int_to_ptr.hbm [resolvable:$true] %s255_s28 }
  0x17   : > { %214 = vmatpush.msra.mxu0 %v211_v3  ;;  %160 = vperm.xlu1 %393, %v145_v7   ;;  %v203_v15 = vld [vmem:[%s624_s1 + $0x30] sm:$0xff]  ;;  %v202_v16 = vld [vmem:[%s624_s1 + $0x28] sm:$0xff]  ;;  %v201_v17 = vld [vmem:[%s624_s1 + $0x20] sm:$0xff]  ;;  %s411_s30 = sshra.s32 %s256_s28, 4  ;;  %s412_s30 = int_to_ptr.hbm [resolvable:$true] %s411_s30 }
  0x18   : > { %332 = vmatpush.msra.mxu1 %v211_v3  ;;  %150 = vperm.xlu0 %392, %v145_v7   ;;  %v200_v18 = vld [vmem:[%s624_s1 + $0x18] sm:$0xff]  ;;  %v199_v19 = vld [vmem:[%s624_s1 + $0x10] sm:$0xff]  ;;  %v198_v20 = vld [vmem:[%s624_s1 + $0x8] sm:$0xff]  ;;  %s413_s13 = scalar_lea.hbm %s412_s30, 16  ;;  %p418_p0 = scmp.lt.s32.totalorder %s412_s30, %s625_s2 }
  0x19   : > { %215 = vmatpush.msra.mxu0 %v210_v5  ;;  %172 = vperm.xlu2 %394, %v145_v7   ;;  %v197_v21 = vld [vmem:[%s624_s1] sm:$0xff]  ;;  %p414_p11 = scmp.ne.s32.totalorder %s412_s30, %s413_s13  ;;  %p419_p1 = scmp.lt.s32.totalorder %s417_s5, %s413_s13 }
  0x1a   : > { %333 = vmatpush.msra.mxu1 %v210_v5 }
  0x1b   : > { %216 = vmatpush.msra.mxu0 %v209_v6  ;;  %p415_p12 = pnand %p414_p11, %p520_p5  ;;  %p420_p2 = por %p419_p1, %p418_p0 }
  0x1c   : > { %334 = vmatpush.msra.mxu1 %v209_v6 }
  0x1d   : > { %217 = vmatpush.msra.mxu0 %v208_v10  ;;  %p416_p13 = pneg %p415_p12 }
  0x1e   : > { %335 = vmatpush.msra.mxu1 %v208_v10 }
  0x1f   : > { %163 = vperm.xlu1 %393, %v146_v8   ;;  %218 = vmatpush.msra.mxu0 %v207_v11  ;;  %p421_p3 = pnand %p420_p2, %p416_p13 }
  0x20   : > { %153 = vperm.xlu0 %392, %v146_v8   ;;  %336 = vmatpush.msra.mxu1 %v207_v11 }
  0x21   : > { %175 = vperm.xlu2 %394, %v146_v8   ;;  %219 = vmatpush.msra.mxu0 %v206_v12 }
  0x22   : > { %337 = vmatpush.msra.mxu1 %v206_v12 }
  0x23   : > { %220 = vmatpush.msra.mxu0 %v205_v13 }
  0x24   : > { %338 = vmatpush.msra.mxu1 %v205_v13 }
  0x25   : > { %221 = vmatpush.msra.mxu0 %v204_v14 }
  0x26   : > { %339 = vmatpush.msra.mxu1 %v204_v14 }
  0x27   : > { %396 = vset.pattern.permute.xlu1 %v464_v9  ;;  %222 = vmatpush.msra.mxu0 %v203_v15 }
  0x28   : > { %395 = vset.pattern.permute.xlu0 %v464_v9  ;;  %187 = vperm.xlu1 %396, %v146_v8  }
  0x29   : > { %184 = vperm.xlu0 %395, %v145_v7   ;;  %340 = vmatpush.msra.mxu1 %v203_v15 }
  0x2a   : > { %223 = vmatpush.msra.mxu0 %v202_v16 }
  0x2b   : > { %341 = vmatpush.msra.mxu1 %v202_v16 }
  0x2c   : > { %224 = vmatpush.msra.mxu0 %v201_v17 }
  0x2d   : > { %342 = vmatpush.msra.mxu1 %v201_v17 }
  0x2e   : > { %225 = vmatpush.msra.mxu0 %v200_v18 }
  0x2f   : > { %343 = vmatpush.msra.mxu1 %v200_v18 }
  0x30   : > { %226 = vmatpush.msra.mxu0 %v199_v19 }
  0x31   : > { %344 = vmatpush.msra.mxu1 %v199_v19 }
  0x32   : > { %227 = vmatpush.msra.mxu0 %v198_v20 }
  0x33   : > { %345 = vmatpush.msra.mxu1 %v198_v20 }
  0x34   : > { %228 = vmatpush.msra.mxu0 %v197_v21 }
  0x35   : > { %346 = vmatpush.msra.mxu1 %v197_v21 }
  0x73   : > { %v173_v25 = vpop.permute.xlu2 %172 }
  0x74   : > { %vm177_vm4 = vcmp.eq.s32.totalorder %v148_v26, %v173_v25 }
  0x75   : > { %v179_v36 = vsel %vm177_vm4, 1, %v462_v2 }
  0x7b   : > { %v176_v31 = vpop.permute.xlu2 %175 }
  0x7c   : > { %vm178_vm5 = vcmp.eq.s32.totalorder %v148_v26, %v176_v31 }
  0x7d   : > { %v180_v37 = vsel %vm178_vm5, 1, %v462_v2 }
  0x89   : > { %v161_v23 = vpop.permute.xlu1 %160 }
  0x8a   : > { %v151_v24 = vpop.permute.xlu0 %150  ;;  %vm165_vm0 = vcmp.eq.s32.totalorder %v148_v26, %v161_v23 }
  0x8b   : > { %vm155_vm1 = vcmp.eq.s32.totalorder %v148_v26, %v151_v24  ;;  %v167_v29 = vsel %vm165_vm0, 1, %v462_v2 }
  0x8c   : > { %v157_v30 = vsel %vm155_vm1, 1, %v462_v2 }
  0x8d   : > { %v169_v34 = vadd.s32 %v167_v29, %v157_v30 }
  0x8f   : > { %v181_v40 = vadd.s32 %v179_v36, %v169_v34 }
  0x91   : > { %v164_v27 = vpop.permute.xlu1 %163 }
  0x92   : > { %v154_v28 = vpop.permute.xlu0 %153  ;;  %vm166_vm2 = vcmp.eq.s32.totalorder %v148_v26, %v164_v27 }
  0x93   : > { %vm156_vm3 = vcmp.eq.s32.totalorder %v148_v26, %v154_v28  ;;  %v168_v32 = vsel %vm166_vm2, 1, %v462_v2 }
  0x94   : > { %v158_v33 = vsel %vm156_vm3, 1, %v462_v2 }
  0x95   : > { %v170_v35 = vadd.s32 %v168_v32, %v158_v33 }
  0x97   : > { %v182_v41 = vadd.s32 %v180_v37, %v170_v35 }
  0x9a   : > { %v188_v38 = vpop.permute.xlu1 %187 }
  0x9b   : > { %v185_v39 = vpop.permute.xlu0 %184  ;;  %vm190_vm6 = vcmp.eq.s32.totalorder %v148_v26, %v188_v38 }
  0x9c   : > { %vm189_vm7 = vcmp.eq.s32.totalorder %v148_v26, %v185_v39  ;;  %v192_v42 = vsel %vm190_vm6, 1, %v462_v2 }
  0x9d   : > { %v191_v43 = vsel %vm189_vm7, 1, %v462_v2  ;;  %v194_v45 = vadd.s32 %v192_v42, %v182_v41 }
  0x9e   : > { %v193_v44 = vadd.s32 %v191_v43, %v181_v40 }
  0x9f   : > { %v196_v47 = vcvt.s32.f32 %v194_v45 }
  0xa0   : > { %v195_v46 = vcvt.s32.f32 %v193_v44 }
  0xa1   : > { %232 = vmatmul.f32.vlgmr.msra.gmra.mxu1 %v196_v47 }
  0xa2   : > { %229 = vmatmul.f32.vlgmr.msra.gmra.mxu0 %v195_v46 }
 0x11e   : > { %v233_v49 = vpop.f32.mrf.mxu1 }
 0x11f   : > { %v230_v48 = vpop.f32.mrf.mxu0  ;;  %v237_v51 = vmul.f32 0.25, %v233_v49 }
 0x120   : > { %v236_v50 = vmul.f32 0.25, %v230_v48 }
 0x121   : > { %239 = vst [vmem:[%s137_s26 + $0x8] sm:$0xff] %v237_v51 }
 0x122   : > { %238 = vst [vmem:[%s137_s26] sm:$0xff] %v236_v50 }
 0x123   : > { %424 = shalt.err (!%p421_p3)
}
 0x124   : > { %s465_s8 = smov 128   ;;  %s466_s14 = smov 8  }
 0x125   : > { %347 = dma.vmem_to_hbm [thread:$0]  (%p520_p5), %s254_s27, 256, %s256_s28, %s241_s29, %s465_s8, %s465_s8, %s466_s14  }
 0x126 PF: > { %p353_p4 = scmp.ge.s32.totalorder %s459_s12, 2  ;;  %s270_s16 = sand.u32 1, %s447_s9  }
 0x127   : > { %s271_s17 = scalar_lea.sflag [#allocation3], %s270_s16 }
 0x128   : > { %p350_p7 = pnand %p353_p4, %p524_p6 }
 0x12a   : > { %p351_p8 = pneg %p350_p7 }
 0x12c   : > { %442 = dma.done.wait (%p351_p8), %s271_s17, 256  }
 0x12d   : > { %444 = vsyncadd (%p351_p8), %s271_s17, 4294967040  ;;  %p12_p9 = scmp.ge.s32.totalorder %s507_s15, 10   ;;  %s628_s9 = smov %s451_s10 }
 0x12e   : > { %s629_s10 = smov %s455_s11  ;;  %s630_s11 = smov %s518_s18 }
 0x12f   : > { %s631_s12 = smov %s507_s15  ;;  %14 = sbr.rel (!%p12_p9) target bundleno = 3 (0x3), region = 63 }
 0x134   :  { %277 = vsyncpa [#allocation3], 1 }
 0x135   :  { %279 = vsyncpa [#allocation3 + $0x1], 1 }

</bundles_post_ra>
